<compile_context>
chip_gen: v5e
topology: v5e:2x2
jax: 0.10.0
libtpu: 0.0.40
codegen_flags: <defaults>
</compile_context>

<pallas_src>
import jax
import jax.numpy as jnp
import numpy as np
from jax.experimental import pallas as pl
from jax.experimental.pallas import tpu as pltpu

# ----------------------------- hyperparameters ------------------------------
VOCAB_SIZE = 50
EMB_DIM = 32
NUM_FILTERS = 8
FILTER_SIZES = (3, 4, 5)
OUTPUT_DIM = 4
PADDING_IDX = 0
SEQ_LEN = 16
BATCH = 2
DROPOUT = 0.5                      # identity at inference (eval mode)

NFS = len(FILTER_SIZES)
CAT = NFS * NUM_FILTERS            # 24 (concat width)
FS_MAX = max(FILTER_SIZES)         # 5
FS_MIN = min(FILTER_SIZES)         # 3
L_TOTAL = SEQ_LEN - FS_MIN + 1     # 14 real window positions
L_BLK = 16                         # per-batch row block (L_TOTAL rounded to 8)
S_PAD = L_BLK + FS_MAX - 1         # 20: padded time so every window index exists
KPACK = 256                        # FS_MAX*VOCAB_SIZE = 250, rounded up to 256

# ----------- packed parameter slab (one [PACK_ROWS, 128] f32 input) ---------
PACK_COLS = 128                    # lane-dense loads / stores everywhere
R_WF = 0                           # [0, 256)   : folded emb@conv weights ([250, 24] used)
R_MASK = R_WF + KPACK              # [256, 288) : additive time mask, [B*L_BLK, 24] used
R_CB = 288                         # conv biases (24 wide)
R_LW = 296                         # [296, 424) : linear weight ([24, 4] used)
R_LB = 424                         # linear bias (4 wide)
PACK_ROWS = 432                    # all region starts are multiples of 8


# --------------------------------- kernel -----------------------------------
def cnn_kernel(ids_ref, params_ref, out_ref):
    # ---- in-kernel permute + time-pad of the raw [S, B] token ids ----
    ids_sb = ids_ref[...]                                           # [S, B] int32
    pad = jnp.zeros((S_PAD - SEQ_LEN, BATCH), jnp.int32)            # pad id 0 (zero emb row;
    ids_pad = jnp.concatenate([ids_sb, pad], axis=0)                #  positions also masked)

    # ---- shifted one-hot over the folded (offset k, vocab v) axis ----
    # onehot[b*L_BLK + t, k*V + v] = 1  iff  ids[t + k, b] == v
    c_iota = jax.lax.broadcasted_iota(jnp.int32, (L_BLK, KPACK), 1)  # [16, 256]
    oh_rows = []
    for b in range(BATCH):
        col = ids_pad[:, b:b + 1]                                    # [S_PAD, 1]
        oh_b = jnp.zeros((L_BLK, KPACK), jnp.float32)
        for k in range(FS_MAX):
            wid = col[k:k + L_BLK, :]                                # [16, 1]
            oh_b = oh_b + (c_iota == (wid + k * VOCAB_SIZE)).astype(jnp.float32)
        oh_rows.append(oh_b)
    onehot = jnp.concatenate(oh_rows, axis=0).astype(jnp.bfloat16)   # [B*16, 256]

    # ---- embedding + all conv branches in ONE bf16 MXU matmul ----
    w_fold = params_ref[R_WF:R_WF + KPACK, :].astype(jnp.bfloat16)   # [256, 128]
    acc = jnp.dot(onehot, w_fold,
                  preferred_element_type=jnp.float32)                # [B*16, 128] f32

    # ---- mask invalid tail windows, max-pool over time, bias + ReLU ----
    # relu(max_t(acc) + b) == max_t(relu(acc + b))  (bias time-constant, ReLU monotone)
    mask = params_ref[R_MASK:R_MASK + BATCH * L_BLK, :]              # [B*16, 128] (0 / -1e30)
    acc = acc + mask
    pooled = jnp.concatenate(
        [jnp.max(acc[b * L_BLK:(b + 1) * L_BLK, :], axis=0, keepdims=True)
         for b in range(BATCH)], axis=0)                             # [B, 128]
    conv_b = params_ref[R_CB:R_CB + 1, :]                            # [1, 128]
    pooled = jnp.maximum(pooled + conv_b, 0.0)                       # [B, 128] f32

    # ---- dropout = identity at inference; final linear (lane-dense output) --
    lin_w = params_ref[R_LW:R_LW + PACK_COLS, :]                     # [128, 128]
    lin_b = params_ref[R_LB:R_LB + 1, :]                             # [1, 128]
    out_ref[...] = jnp.dot(pooled, lin_w,
                           preferred_element_type=jnp.float32) + lin_b


# -------------------------------- wrapper ------------------------------------
@jax.jit
def cnn_forward(text, packed_params):
    """text: int32 [SEQ_LEN, BATCH] token ids (same convention as the PyTorch module)."""
    flops = (2 * BATCH * L_BLK * KPACK * PACK_COLS
             + 2 * BATCH * PACK_COLS * PACK_COLS)
    bytes_accessed = (PACK_ROWS * PACK_COLS * 4
                      + SEQ_LEN * BATCH * 4
                      + BATCH * PACK_COLS * 4)
    vmem = pl.BlockSpec(memory_space=pltpu.MemorySpace.VMEM)
    out_pad = pl.pallas_call(
        cnn_kernel,
        out_shape=jax.ShapeDtypeStruct((BATCH, PACK_COLS), jnp.float32),
        in_specs=[vmem, vmem],
        out_specs=vmem,
        cost_estimate=pl.CostEstimate(flops=flops, transcendentals=0,
                                      bytes_accessed=bytes_accessed),
    )(text, packed_params)
    return out_pad[:, :OUTPUT_DIM]                 # single cheap slice outside the kernel


# ------------------------- deterministic parameters --------------------------
def init_params(key):
    keys = jax.random.split(key, 3 + 2 * len(FILTER_SIZES))
    emb = jax.random.normal(keys[0], (VOCAB_SIZE, EMB_DIM), jnp.float32) * 0.1
    emb = emb.at[PADDING_IDX].set(0.0)             # nn.Embedding(padding_idx=...) zero row
    conv_w, conv_b = [], []
    for i, fs in enumerate(FILTER_SIZES):
        conv_w.append(jax.random.normal(keys[1 + 2 * i],
                                        (fs, EMB_DIM, NUM_FILTERS), jnp.float32) * 0.1)
        conv_b.append(jax.random.normal(keys[2 + 2 * i],
                                        (1, NUM_FILTERS), jnp.float32) * 0.1)
    lin_w = jax.random.normal(keys[-2], (CAT, OUTPUT_DIM), jnp.float32) * 0.1
    lin_b = jax.random.normal(keys[-1], (1, OUTPUT_DIM), jnp.float32) * 0.1
    return {"embedding": emb, "conv_w": conv_w, "conv_b": conv_b,
            "lin_w": lin_w, "lin_b": lin_b}


def pack_params(p):
    """Offline: fold the embedding into the conv weights and pack folded weights,
    time-validity mask, conv biases and linear layer into one [PACK_ROWS, 128]
    f32 slab with 8-aligned row regions."""
    P = np.zeros((PACK_ROWS, PACK_COLS), np.float32)
    emb = np.asarray(p["embedding"], np.float32)                       # [V, E]

    for i, fs in enumerate(FILTER_SIZES):
        w = np.asarray(p["conv_w"][i], np.float32)                     # [fs, E, F]
        c0 = i * NUM_FILTERS
        for k in range(fs):
            # Wfold[k*V + v, c0 + f] = sum_e emb[v, e] * w[k, e, f]
            P[R_WF + k * VOCAB_SIZE:R_WF + (k + 1) * VOCAB_SIZE,
              c0:c0 + NUM_FILTERS] = emb @ w[k]
        # rows for k >= fs stay zero -> offsets past this branch's receptive
        # field (and time-pad positions) contribute exactly 0 to its columns.
        P[R_CB, c0:c0 + NUM_FILTERS] = np.asarray(p["conv_b"][i], np.float32)[0]

    # additive mask: 0 where window position t is a valid conv output for that
    # branch (t < S - fs + 1), -1e30 otherwise (excluded from the max-pool).
    valid = np.repeat(np.array([SEQ_LEN - fs + 1 for fs in FILTER_SIZES]),
                      NUM_FILTERS)                                     # [CAT]
    t_idx = np.arange(L_BLK)[:, None]
    mask_bt = np.where(t_idx < valid[None, :], 0.0, -1e30).astype(np.float32)  # [16, CAT]
    for b in range(BATCH):
        P[R_MASK + b * L_BLK:R_MASK + (b + 1) * L_BLK, :CAT] = mask_bt

    P[R_LW:R_LW + CAT, :OUTPUT_DIM] = np.asarray(p["lin_w"], np.float32)
    P[R_LB, :OUTPUT_DIM] = np.asarray(p["lin_b"], np.float32)[0]
    return jnp.asarray(P)


# --------------------------- pure-numpy reference ----------------------------
def reference_forward(text_np, p):
    """Float64 numpy reference with the PyTorch CNN.forward semantics."""
    emb = np.asarray(p["embedding"], np.float64)
    ids = np.asarray(text_np).T                                        # [B, S]
    x = emb[ids]                                                       # [B, S, E]
    pooled = []
    for i, fs in enumerate(FILTER_SIZES):
        w = np.asarray(p["conv_w"][i], np.float64)                     # [fs, E, F]
        b = np.asarray(p["conv_b"][i], np.float64)[0]                  # [F]
        L = SEQ_LEN - fs + 1
        conv = np.stack([np.einsum("bke,kef->bf", x[:, t:t + fs, :], w)
                         for t in range(L)], axis=1)                   # [B, L, F]
        conv = np.maximum(conv + b[None, None, :], 0.0)
        pooled.append(conv.max(axis=1))                                # [B, F]
    cat = np.concatenate(pooled, axis=1)                               # [B, CAT]
    return cat @ np.asarray(p["lin_w"], np.float64) + np.asarray(p["lin_b"], np.float64)[0]


# ----------------------------------- main ------------------------------------
if __name__ == "__main__":
    key = jax.random.PRNGKey(0)
    pkey, tkey = jax.random.split(key)

    params = init_params(pkey)
    packed = pack_params(params)                       # one-time offline packing

    # token ids, shape [SEQ_LEN, BATCH] as the PyTorch module expects
    text = jax.random.randint(tkey, (SEQ_LEN, BATCH), 0, VOCAB_SIZE, dtype=jnp.int32)

    out = cnn_forward(text, packed)
    out = jax.block_until_ready(out)
    assert out.shape == (BATCH, OUTPUT_DIM)

    ref = reference_forward(np.asarray(text), params)
    assert np.allclose(np.asarray(out), ref, rtol=2e-2, atol=2e-2), \
        f"max abs err {np.max(np.abs(np.asarray(out) - ref))}"

    print("KERNEL_OK")
</pallas_src>

<mosaic_0001>
module attributes {stable_mosaic.version = 11 : i64} {
  func.func @cnn_kernel(%arg0: memref<16x2xi32, #tpu.memory_space<vmem>>, %arg1: memref<432x128xf32, #tpu.memory_space<vmem>>, %arg2: memref<2x128xf32, #tpu.memory_space<vmem>>) attributes {dimension_semantics = [], scalar_prefetch = 0 : i64, scratch_operands = 0 : i64, tpu.core_type = #tpu.core_type<tc>} {
    %c0 = arith.constant 0 : index
    %c0_0 = arith.constant 0 : index
    %0 = vector.load %arg0[%c0, %c0_0] : memref<16x2xi32, #tpu.memory_space<vmem>>, vector<16x2xi32>
    %c0_i32 = arith.constant 0 : i32
    %1 = vector.broadcast %c0_i32 : i32 to vector<4x2xi32>
    %2 = tpu.concatenate %0, %1 in 0 : vector<16x2xi32>, vector<4x2xi32> -> vector<20x2xi32>
    %3 = tpu.iota {dimensions = array<i32: 1>} : vector<16x256xi32>
    %4 = vector.extract_strided_slice %2 {offsets = [0, 0], sizes = [20, 1], strides = [1, 1]} : vector<20x2xi32> to vector<20x1xi32>
    %cst = arith.constant 0.000000e+00 : f32
    %5 = vector.broadcast %cst : f32 to vector<16x256xf32>
    %6 = vector.extract_strided_slice %4 {offsets = [0, 0], sizes = [16, 1], strides = [1, 1]} : vector<20x1xi32> to vector<16x1xi32>
    %c0_i32_1 = arith.constant 0 : i32
    %7 = vector.broadcast %c0_i32_1 : i32 to vector<16x1xi32>
    %8 = arith.addi %6, %7 : vector<16x1xi32>
    %9 = vector.broadcast %8 : vector<16x1xi32> to vector<16x256xi32>
    %10 = arith.cmpi eq, %3, %9 : vector<16x256xi32>
    %11 = arith.extui %10 : vector<16x256xi1> to vector<16x256xi32>
    %12 = arith.sitofp %11 : vector<16x256xi32> to vector<16x256xf32>
    %13 = arith.addf %5, %12 : vector<16x256xf32>
    %14 = vector.extract_strided_slice %4 {offsets = [1, 0], sizes = [16, 1], strides = [1, 1]} : vector<20x1xi32> to vector<16x1xi32>
    %c50_i32 = arith.constant 50 : i32
    %15 = vector.broadcast %c50_i32 : i32 to vector<16x1xi32>
    %16 = arith.addi %14, %15 : vector<16x1xi32>
    %17 = vector.broadcast %16 : vector<16x1xi32> to vector<16x256xi32>
    %18 = arith.cmpi eq, %3, %17 : vector<16x256xi32>
    %19 = arith.extui %18 : vector<16x256xi1> to vector<16x256xi32>
    %20 = arith.sitofp %19 : vector<16x256xi32> to vector<16x256xf32>
    %21 = arith.addf %13, %20 : vector<16x256xf32>
    %22 = vector.extract_strided_slice %4 {offsets = [2, 0], sizes = [16, 1], strides = [1, 1]} : vector<20x1xi32> to vector<16x1xi32>
    %c100_i32 = arith.constant 100 : i32
    %23 = vector.broadcast %c100_i32 : i32 to vector<16x1xi32>
    %24 = arith.addi %22, %23 : vector<16x1xi32>
    %25 = vector.broadcast %24 : vector<16x1xi32> to vector<16x256xi32>
    %26 = arith.cmpi eq, %3, %25 : vector<16x256xi32>
    %27 = arith.extui %26 : vector<16x256xi1> to vector<16x256xi32>
    %28 = arith.sitofp %27 : vector<16x256xi32> to vector<16x256xf32>
    %29 = arith.addf %21, %28 : vector<16x256xf32>
    %30 = vector.extract_strided_slice %4 {offsets = [3, 0], sizes = [16, 1], strides = [1, 1]} : vector<20x1xi32> to vector<16x1xi32>
    %c150_i32 = arith.constant 150 : i32
    %31 = vector.broadcast %c150_i32 : i32 to vector<16x1xi32>
    %32 = arith.addi %30, %31 : vector<16x1xi32>
    %33 = vector.broadcast %32 : vector<16x1xi32> to vector<16x256xi32>
    %34 = arith.cmpi eq, %3, %33 : vector<16x256xi32>
    %35 = arith.extui %34 : vector<16x256xi1> to vector<16x256xi32>
    %36 = arith.sitofp %35 : vector<16x256xi32> to vector<16x256xf32>
    %37 = arith.addf %29, %36 : vector<16x256xf32>
    %38 = vector.extract_strided_slice %4 {offsets = [4, 0], sizes = [16, 1], strides = [1, 1]} : vector<20x1xi32> to vector<16x1xi32>
    %c200_i32 = arith.constant 200 : i32
    %39 = vector.broadcast %c200_i32 : i32 to vector<16x1xi32>
    %40 = arith.addi %38, %39 : vector<16x1xi32>
    %41 = vector.broadcast %40 : vector<16x1xi32> to vector<16x256xi32>
    %42 = arith.cmpi eq, %3, %41 : vector<16x256xi32>
    %43 = arith.extui %42 : vector<16x256xi1> to vector<16x256xi32>
    %44 = arith.sitofp %43 : vector<16x256xi32> to vector<16x256xf32>
    %45 = arith.addf %37, %44 : vector<16x256xf32>
    %46 = vector.extract_strided_slice %2 {offsets = [0, 1], sizes = [20, 1], strides = [1, 1]} : vector<20x2xi32> to vector<20x1xi32>
    %cst_2 = arith.constant 0.000000e+00 : f32
    %47 = vector.broadcast %cst_2 : f32 to vector<16x256xf32>
    %48 = vector.extract_strided_slice %46 {offsets = [0, 0], sizes = [16, 1], strides = [1, 1]} : vector<20x1xi32> to vector<16x1xi32>
    %c0_i32_3 = arith.constant 0 : i32
    %49 = vector.broadcast %c0_i32_3 : i32 to vector<16x1xi32>
    %50 = arith.addi %48, %49 : vector<16x1xi32>
    %51 = vector.broadcast %50 : vector<16x1xi32> to vector<16x256xi32>
    %52 = arith.cmpi eq, %3, %51 : vector<16x256xi32>
    %53 = arith.extui %52 : vector<16x256xi1> to vector<16x256xi32>
    %54 = arith.sitofp %53 : vector<16x256xi32> to vector<16x256xf32>
    %55 = arith.addf %47, %54 : vector<16x256xf32>
    %56 = vector.extract_strided_slice %46 {offsets = [1, 0], sizes = [16, 1], strides = [1, 1]} : vector<20x1xi32> to vector<16x1xi32>
    %c50_i32_4 = arith.constant 50 : i32
    %57 = vector.broadcast %c50_i32_4 : i32 to vector<16x1xi32>
    %58 = arith.addi %56, %57 : vector<16x1xi32>
    %59 = vector.broadcast %58 : vector<16x1xi32> to vector<16x256xi32>
    %60 = arith.cmpi eq, %3, %59 : vector<16x256xi32>
    %61 = arith.extui %60 : vector<16x256xi1> to vector<16x256xi32>
    %62 = arith.sitofp %61 : vector<16x256xi32> to vector<16x256xf32>
    %63 = arith.addf %55, %62 : vector<16x256xf32>
    %64 = vector.extract_strided_slice %46 {offsets = [2, 0], sizes = [16, 1], strides = [1, 1]} : vector<20x1xi32> to vector<16x1xi32>
    %c100_i32_5 = arith.constant 100 : i32
    %65 = vector.broadcast %c100_i32_5 : i32 to vector<16x1xi32>
    %66 = arith.addi %64, %65 : vector<16x1xi32>
    %67 = vector.broadcast %66 : vector<16x1xi32> to vector<16x256xi32>
    %68 = arith.cmpi eq, %3, %67 : vector<16x256xi32>
    %69 = arith.extui %68 : vector<16x256xi1> to vector<16x256xi32>
    %70 = arith.sitofp %69 : vector<16x256xi32> to vector<16x256xf32>
    %71 = arith.addf %63, %70 : vector<16x256xf32>
    %72 = vector.extract_strided_slice %46 {offsets = [3, 0], sizes = [16, 1], strides = [1, 1]} : vector<20x1xi32> to vector<16x1xi32>
    %c150_i32_6 = arith.constant 150 : i32
    %73 = vector.broadcast %c150_i32_6 : i32 to vector<16x1xi32>
    %74 = arith.addi %72, %73 : vector<16x1xi32>
    %75 = vector.broadcast %74 : vector<16x1xi32> to vector<16x256xi32>
    %76 = arith.cmpi eq, %3, %75 : vector<16x256xi32>
    %77 = arith.extui %76 : vector<16x256xi1> to vector<16x256xi32>
    %78 = arith.sitofp %77 : vector<16x256xi32> to vector<16x256xf32>
    %79 = arith.addf %71, %78 : vector<16x256xf32>
    %80 = vector.extract_strided_slice %46 {offsets = [4, 0], sizes = [16, 1], strides = [1, 1]} : vector<20x1xi32> to vector<16x1xi32>
    %c200_i32_7 = arith.constant 200 : i32
    %81 = vector.broadcast %c200_i32_7 : i32 to vector<16x1xi32>
    %82 = arith.addi %80, %81 : vector<16x1xi32>
    %83 = vector.broadcast %82 : vector<16x1xi32> to vector<16x256xi32>
    %84 = arith.cmpi eq, %3, %83 : vector<16x256xi32>
    %85 = arith.extui %84 : vector<16x256xi1> to vector<16x256xi32>
    %86 = arith.sitofp %85 : vector<16x256xi32> to vector<16x256xf32>
    %87 = arith.addf %79, %86 : vector<16x256xf32>
    %88 = tpu.concatenate %45, %87 in 0 : vector<16x256xf32>, vector<16x256xf32> -> vector<32x256xf32>
    %89 = arith.truncf %88 : vector<32x256xf32> to vector<32x256xbf16>
    %c0_8 = arith.constant 0 : index
    %c0_9 = arith.constant 0 : index
    %90 = vector.load %arg1[%c0_8, %c0_9] : memref<432x128xf32, #tpu.memory_space<vmem>>, vector<256x128xf32>
    %91 = arith.truncf %90 : vector<256x128xf32> to vector<256x128xbf16>
    %cst_10 = arith.constant dense<0.000000e+00> : vector<32x128xf32>
    %92 = tpu.matmul %89, %91, %cst_10 {dimension_numbers = #tpu.dot_dimension_numbers<[1], [0], [0], [1], [0, 0, 1, 1], [], []>} : vector<32x256xbf16>, vector<256x128xbf16>, vector<32x128xf32> -> vector<32x128xf32>
    %c256 = arith.constant 256 : index
    %c0_11 = arith.constant 0 : index
    %93 = vector.load %arg1[%c256, %c0_11] : memref<432x128xf32, #tpu.memory_space<vmem>>, vector<32x128xf32>
    %94 = arith.addf %92, %93 : vector<32x128xf32>
    %95 = vector.extract_strided_slice %94 {offsets = [0, 0], sizes = [16, 128], strides = [1, 1]} : vector<32x128xf32> to vector<16x128xf32>
    %cst_12 = arith.constant dense<0xFF800000> : vector<128xf32>
    %96 = vector.multi_reduction <maximumf>, %95, %cst_12 [0] : vector<16x128xf32> to vector<128xf32>
    %97 = vector.shape_cast %96 : vector<128xf32> to vector<1x128xf32>
    %98 = vector.extract_strided_slice %94 {offsets = [16, 0], sizes = [16, 128], strides = [1, 1]} : vector<32x128xf32> to vector<16x128xf32>
    %cst_13 = arith.constant dense<0xFF800000> : vector<128xf32>
    %99 = vector.multi_reduction <maximumf>, %98, %cst_13 [0] : vector<16x128xf32> to vector<128xf32>
    %100 = vector.shape_cast %99 : vector<128xf32> to vector<1x128xf32>
    %101 = tpu.concatenate %97, %100 in 0 : vector<1x128xf32>, vector<1x128xf32> -> vector<2x128xf32>
    %c288 = arith.constant 288 : index
    %c0_14 = arith.constant 0 : index
    %102 = vector.load %arg1[%c288, %c0_14] : memref<432x128xf32, #tpu.memory_space<vmem>>, vector<1x128xf32>
    %103 = vector.broadcast %102 : vector<1x128xf32> to vector<2x128xf32>
    %104 = arith.addf %101, %103 : vector<2x128xf32>
    %cst_15 = arith.constant 0.000000e+00 : f32
    %105 = vector.broadcast %cst_15 : f32 to vector<2x128xf32>
    %106 = arith.maximumf %104, %105 : vector<2x128xf32>
    %c296 = arith.constant 296 : index
    %c0_16 = arith.constant 0 : index
    %107 = vector.load %arg1[%c296, %c0_16] : memref<432x128xf32, #tpu.memory_space<vmem>>, vector<128x128xf32>
    %c424 = arith.constant 424 : index
    %c0_17 = arith.constant 0 : index
    %108 = vector.load %arg1[%c424, %c0_17] : memref<432x128xf32, #tpu.memory_space<vmem>>, vector<1x128xf32>
    %cst_18 = arith.constant dense<0.000000e+00> : vector<2x128xf32>
    %109 = tpu.matmul %106, %107, %cst_18 {dimension_numbers = #tpu.dot_dimension_numbers<[1], [0], [0], [1], [0, 0, 1, 1], [], []>} : vector<2x128xf32>, vector<128x128xf32>, vector<2x128xf32> -> vector<2x128xf32>
    %110 = vector.broadcast %108 : vector<1x128xf32> to vector<2x128xf32>
    %111 = arith.addf %109, %110 : vector<2x128xf32>
    %c0_19 = arith.constant 0 : index
    %c0_20 = arith.constant 0 : index
    %112 = vector.load %arg2[%c0_19, %c0_20] : memref<2x128xf32, #tpu.memory_space<vmem>>, vector<2x128xf32>
    tpu.vector_store %arg2[%c0_19, %c0_20], %111 {strides = array<i32>} : memref<2x128xf32, #tpu.memory_space<vmem>>, vector<2x128xf32>,
    return
  }
}

</mosaic_0001>

<bundles_post_ra>
// kernel: cnn_forward.1
= control target key start
LH: loop header
LB: loop body
LE: loop exit
PB: predicated region body
PF: predicated region fallthrough
CT: control target
= control target key end

     0   :  { %7 = vsyncpa [#allocation3], 0  ;;  %s1051_s0 = inlined_call_operand.vmem [shape: s32[16,2], index: 0, kind: input, shape index: {}]   ;;  %s1052_s1 = inlined_call_operand.hbm [shape: f32[432,128], index: 1, kind: input, shape index: {}]   ;;  %s1053_s2 = inlined_call_operand.hbm [shape: f32[2,128], index: 2, kind: output, shape index: {}]  }
   0x1   :  { %8 = vsyncpa [#allocation4], 0  ;;  %s15_s11 = sshll.u32 %s1052_s1, 4  ;;  %s790_s12 = smov [#allocation2]   ;;  %s16_s11 = int_to_ptr.hbm [resolvable:$true] %s15_s11 }
   0x2   :  { %s17_s13 = sshll.u32 %s790_s12, 4  ;;  %s791_s14 = smov 128   ;;  %s18_s13 = int_to_ptr.vmem [resolvable:$true] %s17_s13 }
   0x3   :  { %s792_s15 = smov 8  }
   0x4   :  { %23 = dma.hbm_to_vmem [thread:$0]  %s16_s11, 6912, %s18_s13, [#allocation3], %s791_s14, %s791_s14, %s792_s15  }
   0x5   :  { %786 = dma.done.wait [#allocation3], 6912  }
   0x6   :  { %787 = vsyncadd [#allocation3], 4294960384  ;;  %v793_v0 = vmov 0   ;;  %v28_v1 = vld [vmem:[%s1051_s0] sm:$0xff]  ;;  %v29_v4 = vld [vmem:[%s1051_s0 + $0x8] sm:$0xff]  ;;  %v794_v11 = vmov 1   ;;  %v30_v49 = vlaneseq }
   0x7   :  { %732 = vset.pattern.permute.xlu1 %v793_v0  ;;  %731 = vset.pattern.permute.xlu0 %v793_v0  ;;  %v109_v2 = vadd.s32 100, %v28_v1  ;;  %v55_v3 = vadd.s32 50, %v28_v1  ;;  %v110_v5 = vadd.s32 100, %v29_v4  ;;  %v56_v6 = vadd.s32 50, %v29_v4  ;;  %v515_v12 = vld [vmem:[#allocation2 + $0x70] sm:$0xff]  ;;  %v516_v13 = vld [vmem:[#allocation2 + $0x78] sm:$0xff] }
   0x8   :  { %730 = vset.pattern.permute.xlu2 %v793_v0  ;;  %v217_v7 = vadd.s32 200, %v28_v1  ;;  %v164_v8 = vadd.s32 150, %v29_v4  ;;  %v163_v9 = vadd.s32 150, %v28_v1  ;;  %v218_v10 = vadd.s32 200, %v29_v4  ;;  %v531_v14 = vld [vmem:[#allocation2 + $0xf0] sm:$0xff]  ;;  %v532_v16 = vld [vmem:[#allocation2 + $0xf8] sm:$0xff] }
   0x9   :  { %34 = vperm.xlu2 %730, %v28_v1   ;;  %112 = vperm.xlu1 %732, %v109_v2   ;;  %v540_v15 = vpack.c.bf16 %v516_v13, %v515_v12  ;;  %v548_v17 = vpack.c.bf16 %v532_v16, %v531_v14  ;;  %v513_v18 = vld [vmem:[#allocation2 + $0x60] sm:$0xff]  ;;  %v514_v19 = vld [vmem:[#allocation2 + $0x68] sm:$0xff]  ;;  %v511_v25 = vld [vmem:[#allocation2 + $0x50] sm:$0xff]  ;;  %v825_v56 = vand.u32 127, %v30_v49  ;;  %vm90_vm9 = vcmask 1046528   ;;  %s796_s0 = smov [#allocation5]  }
   0xa   :  { %58 = vperm.xlu0 %731, %v55_v3   ;;  %v529_v20 = vld [vmem:[#allocation2 + $0xe0] sm:$0xff]  ;;  %v539_v21 = vpack.c.bf16 %v514_v19, %v513_v18  ;;  %v530_v22 = vld [vmem:[#allocation2 + $0xe8] sm:$0xff]  ;;  %v512_v26 = vld [vmem:[#allocation2 + $0x58] sm:$0xff]  ;;  %s655_s19 = sshll.u32 %s796_s0, 4  ;;  %s657_s22 = sshll.u32 %s1053_s2, 4  ;;  %s656_s19 = int_to_ptr.vmem [resolvable:$true] %s655_s19  ;;  %s658_s22 = int_to_ptr.hbm [resolvable:$true] %s657_s22 }
   0xb   :  { %553 = vmatpush.bf16.msra.mxu0 %v540_v15  ;;  %715 = vmatpush.bf16.msra.mxu3 %v540_v15  ;;  %v547_v23 = vpack.c.bf16 %v530_v22, %v529_v20  ;;  %v527_v27 = vld [vmem:[#allocation2 + $0xd0] sm:$0xff]  ;;  %v538_v28 = vpack.c.bf16 %v512_v26, %v511_v25  ;;  %v528_v29 = vld [vmem:[#allocation2 + $0xd8] sm:$0xff]  ;;  %v509_v31 = vld [vmem:[#allocation2 + $0x40] sm:$0xff]  ;;  %v828_v0 = vadd.s32 128, %v825_v56  ;;  %vm124_vm0 = vcmp.eq.s32.totalorder %v825_v56, 100 }
   0xc   :  { %572 = vmatpush.bf16.msra.mxu1 %v548_v17  ;;  %v546_v30 = vpack.c.bf16 %v528_v29, %v527_v27  ;;  %v510_v32 = vld [vmem:[#allocation2 + $0x48] sm:$0xff]  ;;  %v525_v33 = vld [vmem:[#allocation2 + $0xc0] sm:$0xff]  ;;  %v507_v37 = vld [vmem:[#allocation2 + $0x30] sm:$0xff]  ;;  %vm70_vm1 = vcmp.eq.s32.totalorder %v825_v56, 50 }
   0xd   :  { %v537_v34 = vpack.c.bf16 %v510_v32, %v509_v31  ;;  %v526_v35 = vld [vmem:[#allocation2 + $0xc8] sm:$0xff]  ;;  %v508_v38 = vld [vmem:[#allocation2 + $0x38] sm:$0xff]  ;;  %v523_v39 = vld [vmem:[#allocation2 + $0xb0] sm:$0xff]  ;;  %vm179_vm10 = vcmp.eq.s32.totalorder %v828_v0, 150  ;;  %vm233_vm15 = vcmp.eq.s32.totalorder %v828_v0, 200 }
   0xe   :  { %v545_v36 = vpack.c.bf16 %v526_v35, %v525_v33  ;;  %v536_v40 = vpack.c.bf16 %v508_v38, %v507_v37  ;;  %v524_v41 = vld [vmem:[#allocation2 + $0xb8] sm:$0xff]  ;;  %v505_v44 = vld [vmem:[#allocation2 + $0x20] sm:$0xff]  ;;  %v506_v45 = vld [vmem:[#allocation2 + $0x28] sm:$0xff] }
   0xf   :  { %554 = vmatpush.bf16.msra.mxu0 %v539_v21  ;;  %716 = vmatpush.bf16.msra.mxu3 %v539_v21  ;;  %v544_v43 = vpack.c.bf16 %v524_v41, %v523_v39  ;;  %v521_v46 = vld [vmem:[#allocation2 + $0xa0] sm:$0xff]  ;;  %v535_v47 = vpack.c.bf16 %v506_v45, %v505_v44  ;;  %v522_v48 = vld [vmem:[#allocation2 + $0xa8] sm:$0xff]  ;;  %v503_v51 = vld [vmem:[#allocation2 + $0x10] sm:$0xff] }
  0x10   :  { %573 = vmatpush.bf16.msra.mxu1 %v547_v23  ;;  %v543_v50 = vpack.c.bf16 %v522_v48, %v521_v46  ;;  %v504_v52 = vld [vmem:[#allocation2 + $0x18] sm:$0xff]  ;;  %v519_v53 = vld [vmem:[#allocation2 + $0x90] sm:$0xff]  ;;  %v501_v59 = vld [vmem:[#allocation2] sm:$0xff] }
  0x11   :  { %37 = vperm.xlu2 %730, %v29_v4   ;;  %115 = vperm.xlu1 %732, %v110_v5   ;;  %v534_v54 = vpack.c.bf16 %v504_v52, %v503_v51  ;;  %v520_v55 = vld [vmem:[#allocation2 + $0x98] sm:$0xff]  ;;  %v502_v60 = vld [vmem:[#allocation2 + $0x8] sm:$0xff]  ;;  %v517_v61 = vld [vmem:[#allocation2 + $0x80] sm:$0xff] }
  0x12   :  { %61 = vperm.xlu0 %731, %v56_v6   ;;  %v542_v57 = vpack.c.bf16 %v520_v55, %v519_v53  ;;  %v533_v62 = vpack.c.bf16 %v502_v60, %v501_v59  ;;  %v518_v63 = vld [vmem:[#allocation2 + $0x88] sm:$0xff] }
  0x13   :  { %555 = vmatpush.bf16.msra.mxu0 %v538_v28  ;;  %717 = vmatpush.bf16.msra.mxu3 %v538_v28 }
  0x14   :  { %574 = vmatpush.bf16.msra.mxu1 %v546_v30 }
  0x17   :  { %556 = vmatpush.bf16.msra.mxu0 %v537_v34  ;;  %718 = vmatpush.bf16.msra.mxu3 %v537_v34 }
  0x18   :  { %575 = vmatpush.bf16.msra.mxu1 %v545_v36 }
  0x19   :  { %220 = vperm.xlu2 %730, %v217_v7   ;;  %169 = vperm.xlu1 %732, %v164_v8  }
  0x1a   :  { %166 = vperm.xlu0 %731, %v163_v9  }
  0x1b   :  { %557 = vmatpush.bf16.msra.mxu0 %v536_v40  ;;  %719 = vmatpush.bf16.msra.mxu3 %v536_v40 }
  0x1c   :  { %576 = vmatpush.bf16.msra.mxu1 %v544_v43 }
  0x1f   :  { %558 = vmatpush.bf16.msra.mxu0 %v535_v47  ;;  %720 = vmatpush.bf16.msra.mxu3 %v535_v47 }
  0x20   :  { %577 = vmatpush.bf16.msra.mxu1 %v543_v50 }
  0x21   :  { %734 = vset.pattern.permute.xlu2 %v794_v11  ;;  %733 = vset.pattern.permute.xlu1 %v794_v11 }
  0x22   :  { %297 = vperm.xlu2 %734, %v56_v6   ;;  %223 = vperm.xlu0 %731, %v218_v10  }
  0x23   :  { %294 = vperm.xlu1 %733, %v55_v3   ;;  %559 = vmatpush.bf16.msra.mxu0 %v534_v54 }
  0x24   :  { %721 = vmatpush.bf16.msra.mxu3 %v534_v54  ;;  %578 = vmatpush.bf16.msra.mxu1 %v542_v57 }
  0x27   :  { %560 = vmatpush.bf16.msra.mxu0 %v533_v62 }
  0x28   :  { %722 = vmatpush.bf16.msra.mxu3 %v533_v62 }
  0x2a   :  { %272 = vperm.xlu2 %734, %v28_v1   ;;  %735 = vset.pattern.permute.xlu0 %v794_v11  ;;  %v541_v1 = vpack.c.bf16 %v518_v63, %v517_v61 }
  0x2b   :  { %348 = vperm.xlu1 %733, %v110_v5   ;;  %345 = vperm.xlu0 %735, %v109_v2  }
  0x2c   :  { %579 = vmatpush.bf16.msra.mxu1 %v541_v1 }
  0x32   :  { %396 = vperm.xlu2 %734, %v163_v9  }
  0x33   :  { %275 = vperm.xlu1 %733, %v29_v4   ;;  %399 = vperm.xlu0 %735, %v164_v8   ;;  %v795_v4 = vmov 0.0  }
  0x34   :  { %v837_v5 = vsel %vm124_vm0, 1.0, %v795_v4  ;;  %v840_v6 = vsel %vm70_vm1, 1.0, %v795_v4  ;;  %v862_v13 = vrot.slane %v795_v4, 1  ;;  %v879_v21 = vrot.slane %v795_v4, 3 }
  0x35   :  { %v97_v12 = vrot.slane %v840_v6, 1  ;;  %v884_v23 = vsel %vm179_vm10, 1.0, %v795_v4  ;;  %vm144_vm1 = vcmask 1045504   ;;  %v895_v30 = vrot.slane %v795_v4, 4 }
  0x36   :  { %v207_v31 = vrot.slane %v884_v23, 3  ;;  %v899_v32 = vsel %vm233_vm15, 1.0, %v795_v4 }
  0x37   :  { %v261_v63 = vrot.slane %v899_v32, 4 }
  0x3a   :  { %450 = vperm.xlu2 %734, %v218_v10   ;;  %v151_v10 = vrot.slane %v837_v5, 2 }
  0x3b   :  { %447 = vperm.xlu1 %733, %v217_v7   ;;  %v845_v7 = vrot.slane %v795_v4, 2 }
  0x63   :  { %v821_v24 = vpop.permute.xlu2 %34 }
  0x64   :  { %vm39_vm2 = vcmp.eq.s32.totalorder %v825_v56, %v821_v24  ;;  %vm40_vm3 = vcmp.eq.s32.totalorder %v828_v0, %v821_v24 }
  0x65   :  { %v848_v8 = vsel %vm39_vm2, 1.0, %v795_v4  ;;  %v851_v9 = vsel %vm40_vm3, 1.0, %v795_v4 }
  0x6b   :  { %v823_v42 = vpop.permute.xlu2 %37 }
  0x6c   :  { %vm41_vm4 = vcmp.eq.s32.totalorder %v825_v56, %v823_v42  ;;  %vm42_vm5 = vcmp.eq.s32.totalorder %v828_v0, %v823_v42 }
  0x6d   :  { %v669_v14 = vsel %vm41_vm4, 1.0, %v795_v4  ;;  %v670_v17 = vsel %vm42_vm5, 1.0, %v795_v4  ;;  %vm198_vm4 = vcmask 1044480  }
  0x73   :  { %v221_v58 = vpop.permute.xlu2 %220 }
  0x74   :  { %vm228_vm6 = vcmp.eq.s32.totalorder %v825_v56, %v221_v58  ;;  %vm229_vm7 = vcmp.eq.s32.totalorder %v828_v0, %v221_v58 }
  0x75   :  { %v872_v18 = vsel %vm228_vm6, 1.0, %v795_v4  ;;  %v875_v19 = vsel %vm229_vm7, 1.0, %v795_v4 }
  0x76   :  { %v253_v27 = vrot.slane %v872_v18, 4  ;;  %v256_v28 = vrot.slane %v875_v19, 4 }
  0x7b   :  { %v113_v2 = vpop.permute.xlu1 %112 }
  0x7c   :  { %v59_v3 = vpop.permute.xlu0 %58  ;;  %v858_v11 = vpop.permute.xlu2 %297  ;;  %vm120_vm14 = vcmp.eq.s32.totalorder %v825_v56, %v113_v2  ;;  %vm121_vm0 = vcmp.eq.s32.totalorder %v828_v0, %v113_v2 }
  0x7d   :  { %vm66_vm8 = vcmp.eq.s32.totalorder %v825_v56, %v59_v3  ;;  %vm67_vm11 = vcmp.eq.s32.totalorder %v828_v0, %v59_v3  ;;  %v676_v33 = vsel %vm120_vm14, 1.0, %v795_v4  ;;  %v677_v34 = vsel %vm121_vm0, 1.0, %v795_v4 }
  0x7e   :  { %v671_v22 = vsel %vm66_vm8, 1.0, %v795_v4  ;;  %v672_v24 = vsel %vm67_vm11, 1.0, %v795_v4  ;;  %vm304_vm5 = vcmp.eq.s32.totalorder %v825_v56, %v858_v11  ;;  %vm305_vm6 = vcmp.eq.s32.totalorder %v828_v0, %v858_v11 }
  0x7f   :  { %v91_v29 = vrot.slane %v671_v22, 1  ;;  %v94_v35 = vrot.slane %v672_v24, 1  ;;  %v145_v57 = vrot.slane %v676_v33, 2  ;;  %v148_v58 = vrot.slane %v677_v34, 2 }
  0x80   :  { %v697_v34 = vsel %vm304_vm5, 1.0, %v795_v4 }
  0x83   :  { %v116_v15 = vpop.permute.xlu1 %115 }
  0x84   :  { %v62_v16 = vpop.permute.xlu0 %61  ;;  %vm122_vm2 = vcmp.eq.s32.totalorder %v825_v56, %v116_v15  ;;  %vm123_vm3 = vcmp.eq.s32.totalorder %v828_v0, %v116_v15  ;;  %v915_v43 = vpop.permute.xlu2 %272 }
  0x85   :  { %vm68_vm12 = vcmp.eq.s32.totalorder %v825_v56, %v62_v16  ;;  %vm69_vm13 = vcmp.eq.s32.totalorder %v828_v0, %v62_v16  ;;  %v678_v37 = vsel %vm122_vm2, 1.0, %v795_v4  ;;  %v679_v38 = vsel %vm123_vm3, 1.0, %v795_v4 }
  0x86   :  { %v673_v20 = vsel %vm68_vm12, 1.0, %v795_v4  ;;  %v674_v25 = vsel %vm69_vm13, 1.0, %v795_v4  ;;  %v146_v48 = vrot.slane %v678_v37, 2  ;;  %v149_v49 = vrot.slane %v679_v38, 2 }
  0x87   :  { %v92_v26 = vrot.slane %v673_v20, 1  ;;  %v95_v36 = vrot.slane %v674_v25, 1  ;;  %vm252_vm12 = vcmask 1043456  }
  0x88   :  { %v147_v1 = vsel %vm144_vm1, %v145_v57, %v146_v48  ;;  %v150_v2 = vsel %vm144_vm1, %v148_v58, %v149_v49  ;;  %v152_v3 = vsel %vm144_vm1, %v146_v48, %v151_v10 }
  0x89   :  { %v93_v39 = vsel %vm90_vm9, %v91_v29, %v92_v26  ;;  %v98_v40 = vsel %vm90_vm9, %v92_v26, %v97_v12  ;;  %v96_v50 = vsel %vm90_vm9, %v94_v35, %v95_v36  ;;  %v100_v51 = vsel %vm90_vm9, %v95_v36, %v862_v13 }
  0x8a   :  { %v105_v52 = vadd.f32 %v848_v8, %v93_v39  ;;  %v107_v53 = vadd.f32 %v669_v14, %v98_v40  ;;  %v106_v61 = vadd.f32 %v851_v9, %v96_v50  ;;  %v108_v62 = vadd.f32 %v670_v17, %v100_v51 }
  0x8b   :  { %v170_v41 = vpop.permute.xlu1 %169  ;;  %v154_v8 = vsel %vm144_vm1, %v149_v49, %v845_v7  ;;  %v698_v35 = vsel %vm305_vm6, 1.0, %v795_v4  ;;  %v327_v51 = vrot.slane %v697_v34, 1 }
  0x8c   :  { %v167_v42 = vpop.permute.xlu0 %166  ;;  %vm176_vm7 = vcmp.eq.s32.totalorder %v825_v56, %v170_v41  ;;  %vm177_vm8 = vcmp.eq.s32.totalorder %v828_v0, %v170_v41  ;;  %v159_v15 = vadd.f32 %v147_v1, %v105_v52  ;;  %v161_v16 = vadd.f32 %v152_v3, %v107_v53  ;;  %v957_v36 = vpop.permute.xlu2 %396 }
  0x8d   :  { %vm174_vm10 = vcmp.eq.s32.totalorder %v825_v56, %v167_v42  ;;  %vm175_vm11 = vcmp.eq.s32.totalorder %v828_v0, %v167_v42  ;;  %v683_v44 = vsel %vm176_vm7, 1.0, %v795_v4  ;;  %v684_v45 = vsel %vm177_vm8, 1.0, %v795_v4 }
  0x8e   :  { %v681_v46 = vsel %vm174_vm10, 1.0, %v795_v4  ;;  %v682_v47 = vsel %vm175_vm11, 1.0, %v795_v4  ;;  %v200_v54 = vrot.slane %v683_v44, 3  ;;  %v203_v59 = vrot.slane %v684_v45, 3 }
  0x8f   :  { %v199_v55 = vrot.slane %v681_v46, 3  ;;  %v202_v60 = vrot.slane %v682_v47, 3  ;;  %v160_v29 = vadd.f32 %v150_v2, %v106_v61  ;;  %v162_v33 = vadd.f32 %v154_v8, %v108_v62 }
  0x90   :  { %v206_v17 = vsel %vm198_vm4, %v200_v54, %v879_v21  ;;  %v208_v24 = vsel %vm198_vm4, %v203_v59, %v207_v31  ;;  %v330_v18 = vrot.slane %v698_v35, 1  ;;  %vm277_vm7 = vcmp.eq.s32.totalorder %v825_v56, %v915_v43 }
  0x91   :  { %v201_v9 = vsel %vm198_vm4, %v199_v55, %v200_v54  ;;  %v204_v22 = vsel %vm198_vm4, %v202_v60, %v203_v59  ;;  %v215_v40 = vadd.f32 %v206_v17, %v161_v16  ;;  %v216_v42 = vadd.f32 %v208_v24, %v162_v33 }
  0x92   :  { %v213_v39 = vadd.f32 %v201_v9, %v159_v15  ;;  %v214_v41 = vadd.f32 %v204_v22, %v160_v29  ;;  %vm278_vm8 = vcmp.eq.s32.totalorder %v828_v0, %v915_v43  ;;  %v333_v59 = vsel %vm90_vm9, %v327_v51, %v97_v12 }
  0x93   :  { %v335_v60 = vsel %vm90_vm9, %v330_v18, %v862_v13  ;;  %v691_v43 = vsel %vm277_vm7, 1.0, %v795_v4  ;;  %v692_v3 = vsel %vm278_vm8, 1.0, %v795_v4  ;;  %vm404_vm10 = vcmp.eq.s32.totalorder %v825_v56, %v957_v36 }
  0x94   :  { %v224_v14 = vpop.permute.xlu0 %223  ;;  %v451_v58 = vpop.permute.xlu2 %450  ;;  %vm405_vm11 = vcmp.eq.s32.totalorder %v828_v0, %v957_v36  ;;  %v705_v34 = vsel %vm404_vm10, 1.0, %v795_v4 }
  0x95   :  { %vm230_vm13 = vcmp.eq.s32.totalorder %v825_v56, %v224_v14  ;;  %vm231_vm14 = vcmp.eq.s32.totalorder %v828_v0, %v224_v14  ;;  %v295_v20 = vpop.permute.xlu1 %294  ;;  %v706_v35 = vsel %vm405_vm11, 1.0, %v795_v4 }
  0x96   :  { %v688_v25 = vsel %vm230_vm13, 1.0, %v795_v4  ;;  %v689_v26 = vsel %vm231_vm14, 1.0, %v795_v4  ;;  %vm302_vm15 = vcmp.eq.s32.totalorder %v825_v56, %v295_v20  ;;  %vm303_vm0 = vcmp.eq.s32.totalorder %v828_v0, %v295_v20 }
  0x97   :  { %v254_v37 = vrot.slane %v688_v25, 4  ;;  %v257_v38 = vrot.slane %v689_v26, 4  ;;  %v696_v53 = vsel %vm303_vm0, 1.0, %v795_v4  ;;  %vm457_vm13 = vcmp.eq.s32.totalorder %v825_v56, %v451_v58 }
  0x98   :  { %vm458_vm14 = vcmp.eq.s32.totalorder %v828_v0, %v451_v58 }
  0x99   :  { %v255_v44 = vsel %vm252_vm12, %v253_v27, %v254_v37  ;;  %v260_v11 = vsel %vm252_vm12, %v254_v37, %v895_v30  ;;  %v258_v47 = vsel %vm252_vm12, %v256_v28, %v257_v38  ;;  %v262_v48 = vsel %vm252_vm12, %v257_v38, %v261_v63 }
  0x9a   :  { %v267_v45 = vadd.f32 %v255_v44, %v213_v39  ;;  %v269_v46 = vadd.f32 %v260_v11, %v215_v40  ;;  %v268_v49 = vadd.f32 %v258_v47, %v214_v41  ;;  %v270_v50 = vadd.f32 %v262_v48, %v216_v42 }
  0x9b   :  { %v695_v27 = vsel %vm302_vm15, 1.0, %v795_v4  ;;  %v329_v28 = vrot.slane %v696_v53, 1  ;;  %v712_v37 = vsel %vm457_vm13, 1.0, %v795_v4  ;;  %v713_v38 = vsel %vm458_vm14, 1.0, %v795_v4 }
  0x9c   :  { %v497_v52 = vpack.c.bf16 %v269_v46, %v267_v45  ;;  %v498_v57 = vpack.c.bf16 %v270_v50, %v268_v49  ;;  %v326_v19 = vrot.slane %v695_v27, 1  ;;  %v428_v46 = vrot.slane %v705_v34, 3 }
  0x9d   :  { %v349_v54 = vpop.permute.xlu1 %348  ;;  %v346_v55 = vpop.permute.xlu0 %345  ;;  %v331_v12 = vsel %vm90_vm9, %v329_v28, %v330_v18  ;;  %v431_v47 = vrot.slane %v706_v35, 3  ;;  %v480_v50 = vrot.slane %v712_v37, 4  ;;  %v483_v5 = vrot.slane %v713_v38, 4  ;;  %v612_v38 = vld [vmem:[#allocation2 + $0x130] sm:$0xff] }
  0x9e   :  { %561 = vmatmul.bf16.vlgmr.msra.gmra.mxu0 %v497_v52  ;;  %vm355_vm2 = vcmp.eq.s32.totalorder %v825_v56, %v349_v54  ;;  %vm356_vm3 = vcmp.eq.s32.totalorder %v828_v0, %v349_v54  ;;  %vm353_vm5 = vcmp.eq.s32.totalorder %v825_v56, %v346_v55  ;;  %vm354_vm6 = vcmp.eq.s32.totalorder %v828_v0, %v346_v55 }
  0x9f   :  { %580 = vmatmul.bf16.vlgmr.msra.gmra.mxu1 %v498_v57  ;;  %v702_v61 = vsel %vm355_vm2, 1.0, %v795_v4  ;;  %v703_v62 = vsel %vm356_vm3, 1.0, %v795_v4  ;;  %v700_v1 = vsel %vm353_vm5, 1.0, %v795_v4  ;;  %v701_v2 = vsel %vm354_vm6, 1.0, %v795_v4 }
  0xa0   :  { %v328_v6 = vsel %vm90_vm9, %v326_v19, %v327_v51  ;;  %v378_v13 = vrot.slane %v702_v61, 2  ;;  %v381_v8 = vrot.slane %v703_v62, 2  ;;  %v377_v14 = vrot.slane %v700_v1, 2  ;;  %v626_v1 = vld [vmem:[#allocation2 + $0x1a0] sm:$0xff] }
  0xa1   :  { %v380_v15 = vrot.slane %v701_v2, 2  ;;  %v340_v42 = vadd.f32 %v691_v43, %v328_v6  ;;  %v341_v44 = vadd.f32 %v692_v3, %v331_v12  ;;  %v486_v28 = vsel %vm252_vm12, %v480_v50, %v895_v30  ;;  %v625_v2 = vld [vmem:[#allocation2 + $0x198] sm:$0xff]  ;;  %629 = vmatpush.msra.mxu2 %v626_v1  ;;  %v624_v43 = vld [vmem:[#allocation2 + $0x190] sm:$0xff]  ;;  %v623_v30 = vld [vmem:[#allocation2 + $0x188] sm:$0xff] }
  0xa2   :  { %v379_v39 = vsel %vm144_vm1, %v377_v14, %v378_v13  ;;  %v384_v41 = vsel %vm144_vm1, %v378_v13, %v151_v10  ;;  %v386_v36 = vsel %vm144_vm1, %v381_v8, %v845_v7  ;;  %v622_v6 = vld [vmem:[#allocation2 + $0x180] sm:$0xff]  ;;  %v620_v12 = vld [vmem:[#allocation2 + $0x170] sm:$0xff]  ;;  %v619_v13 = vld [vmem:[#allocation2 + $0x168] sm:$0xff] }
  0xa3   :  { %v382_v40 = vsel %vm144_vm1, %v380_v15, %v381_v8  ;;  %v391_v10 = vadd.f32 %v379_v39, %v340_v42  ;;  %630 = vmatpush.msra.mxu2 %v625_v2  ;;  %v618_v8 = vld [vmem:[#allocation2 + $0x160] sm:$0xff]  ;;  %v550_v14 = vld [vmem:[#allocation2 + $0x108] sm:$0xff]  ;;  %v552_v42 = vld [vmem:[#allocation2 + $0x118] sm:$0xff] }
  0xa4   :  { %v392_v52 = vadd.f32 %v382_v40, %v341_v44  ;;  %v611_v40 = vld [vmem:[#allocation2 + $0x128] sm:$0xff] }
  0xa5   :  { %v276_v16 = vpop.permute.xlu1 %275  ;;  %v400_v9 = vpop.permute.xlu0 %399  ;;  %631 = vmatpush.msra.mxu2 %v624_v43 }
  0xa6   :  { %vm279_vm15 = vcmp.eq.s32.totalorder %v825_v56, %v276_v16  ;;  %vm280_vm0 = vcmp.eq.s32.totalorder %v828_v0, %v276_v16  ;;  %vm406_vm2 = vcmp.eq.s32.totalorder %v825_v56, %v400_v9  ;;  %vm407_vm3 = vcmp.eq.s32.totalorder %v828_v0, %v400_v9  ;;  %v617_v16 = vld [vmem:[#allocation2 + $0x158] sm:$0xff]  ;;  %v549_v9 = vld [vmem:[#allocation2 + $0x100] sm:$0xff] }
  0xa7   :  { %v693_v17 = vsel %vm279_vm15, 1.0, %v795_v4  ;;  %v694_v20 = vsel %vm280_vm0, 1.0, %v795_v4  ;;  %v707_v22 = vsel %vm406_vm2, 1.0, %v795_v4  ;;  %v708_v24 = vsel %vm407_vm3, 1.0, %v795_v4  ;;  %632 = vmatpush.msra.mxu2 %v623_v30 }
  0xa8   :  { %v342_v25 = vadd.f32 %v693_v17, %v333_v59  ;;  %v343_v26 = vadd.f32 %v694_v20, %v335_v60  ;;  %v429_v29 = vrot.slane %v707_v22, 3  ;;  %v432_v33 = vrot.slane %v708_v24, 3  ;;  %v616_v20 = vld [vmem:[#allocation2 + $0x150] sm:$0xff]  ;;  %v615_v24 = vld [vmem:[#allocation2 + $0x148] sm:$0xff] }
  0xa9   :  { %633 = vmatpush.msra.mxu2 %v622_v6 }
  0xaa   :  { %v393_v11 = vadd.f32 %v384_v41, %v342_v25  ;;  %v394_v45 = vadd.f32 %v386_v36, %v343_v26  ;;  %v435_v48 = vsel %vm198_vm4, %v429_v29, %v879_v21  ;;  %v437_v49 = vsel %vm198_vm4, %v432_v33, %v207_v31  ;;  %v614_v26 = vld [vmem:[#allocation2 + $0x140] sm:$0xff]  ;;  %v551_v41 = vld [vmem:[#allocation2 + $0x110] sm:$0xff] }
  0xab   :  { %v430_v7 = vsel %vm198_vm4, %v428_v46, %v429_v29  ;;  %v433_v18 = vsel %vm198_vm4, %v431_v47, %v432_v33  ;;  %v613_v33 = vld [vmem:[#allocation2 + $0x138] sm:$0xff]  ;;  %vm605_vm4 = vcmask 1040384  }
  0xac   :  { %v444_v23 = vadd.f32 %v435_v48, %v393_v11  ;;  %v445_v53 = vadd.f32 %v437_v49, %v394_v45  ;;  %v442_v55 = vadd.f32 %v430_v7, %v391_v10  ;;  %v443_v57 = vadd.f32 %v433_v18, %v392_v52 }
  0xad   :  { %v448_v51 = vpop.permute.xlu1 %447 }
  0xae   :  { %vm455_vm9 = vcmp.eq.s32.totalorder %v825_v56, %v448_v51  ;;  %vm456_vm1 = vcmp.eq.s32.totalorder %v828_v0, %v448_v51  ;;  %v488_v56 = vsel %vm252_vm12, %v483_v5, %v261_v63  ;;  %v495_v59 = vadd.f32 %v486_v28, %v444_v23  ;;  %v621_v63 = vld [vmem:[#allocation2 + $0x178] sm:$0xff]  ;;  %v736_v23 = vld [vmem:[#allocation2 + $0x120] ss:$0 sm:$0xff] }
  0xaf   :  { %v710_v27 = vsel %vm455_vm9, 1.0, %v795_v4  ;;  %v711_v21 = vsel %vm456_vm1, 1.0, %v795_v4  ;;  %v496_v60 = vadd.f32 %v488_v56, %v445_v53  ;;  %634 = vmatpush.msra.mxu2 %v621_v63 }
  0xb0   :  { %v479_v31 = vrot.slane %v710_v27, 4  ;;  %v482_v54 = vrot.slane %v711_v21, 4 }
  0xb1   :  { %635 = vmatpush.msra.mxu2 %v620_v12 }
  0xb2   :  { %v481_v19 = vsel %vm252_vm12, %v479_v31, %v480_v50  ;;  %v484_v58 = vsel %vm252_vm12, %v482_v54, %v483_v5 }
  0xb3   :  { %v493_v0 = vadd.f32 %v481_v19, %v442_v55  ;;  %v494_v4 = vadd.f32 %v484_v58, %v443_v57  ;;  %636 = vmatpush.msra.mxu2 %v619_v13  ;;  %v737_v19 = vld [vmem:[#allocation2 + $0x1a8] ss:$0 sm:$0xff] }
  0xb5   :  { %v499_v61 = vpack.c.bf16 %v495_v59, %v493_v0  ;;  %v500_v62 = vpack.c.bf16 %v496_v60, %v494_v4  ;;  %637 = vmatpush.msra.mxu2 %v618_v8 }
  0xb7   :  { %566 = vmatmul.bf16.vlgmr.msra.gmra.mxu3 %v499_v61  ;;  %585 = vmatmul.bf16.gmra.mxu1 %v500_v62 }
  0xb8   :  { %638 = vmatpush.msra.mxu2 %v617_v16 }
  0xba   :  { %639 = vmatpush.msra.mxu2 %v616_v20 }
  0xbc   :  { %640 = vmatpush.msra.mxu2 %v615_v24 }
  0xbe   :  { %641 = vmatpush.msra.mxu2 %v614_v26 }
  0xc0   :  { %642 = vmatpush.msra.mxu2 %v613_v33 }
  0xc2   :  { %643 = vmatpush.msra.mxu2 %v612_v38 }
  0xc4   :  { %644 = vmatpush.msra.mxu2 %v611_v40 }
 0x11b   :  { %v562_v3 = vpop.f32.mrf.mxu0 }
 0x11c   :  { %v581_v32 = vpop.f32.mrf.mxu1  ;;  %v563_v25 = vadd.f32 %v562_v3, %v549_v9 }
 0x11e   :  { %v582_v34 = vadd.f32 %v581_v32, %v563_v25 }
 0x123   :  { %v564_v15 = vpop.f32.mrf.mxu0 }
 0x124   :  { %v583_v17 = vpop.f32.mrf.mxu1  ;;  %v565_v22 = vadd.f32 %v564_v15, %v550_v14 }
 0x126   :  { %v584_v29 = vadd.f32 %v583_v17, %v565_v22 }
 0x128   :  { %v591_v39 = vmax.f32 %v582_v34, %v584_v29 }
 0x12a   :  { %v592_v36 = vrot.slane %v591_v39, 4 }
 0x12c   :  { %v593_v45 = vmax.f32 %v591_v39, %v592_v36 }
 0x12e   :  { %v594_v50 = vrot.slane %v593_v45, 2 }
 0x130   :  { %v595_v10 = vmax.f32 %v593_v45, %v594_v50 }
 0x132   :  { %v596_v18 = vrot.slane %v595_v10, 1 }
 0x134   :  { %v586_v35 = vpop.f32.mrf.mxu1  ;;  %v597_v53 = vmax.f32 %v595_v10, %v596_v18 }
 0x13a   :  { %v567_v37 = vpop.f32.mrf.mxu3 }
 0x13b   :  { %v568_v44 = vadd.f32 %v567_v37, %v551_v41 }
 0x13c   :  { %v588_v47 = vpop.f32.mrf.mxu1 }
 0x13d   :  { %v587_v48 = vadd.f32 %v586_v35, %v568_v44 }
 0x142   :  { %v569_v11 = vpop.f32.mrf.mxu3 }
 0x143   :  { %v570_v46 = vadd.f32 %v569_v11, %v552_v42 }
 0x145   :  { %v589_v49 = vadd.f32 %v588_v47, %v570_v46 }
 0x147   :  { %v598_v5 = vmax.f32 %v587_v48, %v589_v49 }
 0x149   :  { %v599_v51 = vrot.slane %v598_v5, 4 }
 0x14b   :  { %v600_v52 = vmax.f32 %v598_v5, %v599_v51 }
 0x14d   :  { %v601_v7 = vrot.slane %v600_v52, 2 }
 0x14f   :  { %v602_v27 = vmax.f32 %v600_v52, %v601_v7 }
 0x151   :  { %v603_v21 = vrot.slane %v602_v27, 1 }
 0x153   :  { %v604_v31 = vmax.f32 %v602_v27, %v603_v21 }
 0x155   :  { %v606_v54 = vsel %vm605_vm4, %v597_v53, %v604_v31 }
 0x156   :  { %v609_v55 = vadd.f32 %v736_v23, %v606_v54 }
 0x158   :  { %v610_v57 = vmax.f32 %v609_v55, 0.0 }
 0x15a   :  { %645 = vmatmul.f32.vlgmr.msra.gmra.mxu2 %v610_v57 }
 0x1dd   :  { %v646_v28 = vpop.f32.mrf.mxu2 }
 0x1de   :  { %v647_v58 = vadd.f32 %v737_v19, %v646_v28 }
 0x1e0   :  { %649 = vst [vmem:[#allocation5] sm:$0x3] %v647_v58 }
 0x1e1   :  { %660 = dma.vmem_to_hbm [thread:$0]  %s656_s19, 32, %s658_s22, [#allocation4]  }
 0x1e2   :  { %788 = dma.done.wait [#allocation4], 32  }
 0x1e3   :  { %789 = vsyncadd [#allocation4], 4294967264 }
 0x1e4   :  { %665 = vsyncpa [#allocation3], 1 }
 0x1e5   :  { %666 = vsyncpa [#allocation4], 1 }

</bundles_post_ra>
